<compile_context>
chip_gen: v5e
topology: v5e:2x2
jax: 0.10.0
libtpu: 0.0.40
codegen_flags: <defaults>
</compile_context>

<pallas_src>
import functools

import jax
import jax.numpy as jnp
from jax.experimental import pallas as pl
from jax.experimental.pallas import tpu as pltpu


def _focal_body(tgt_ref, logits_ref, at_ref, out_ref, *,
                gamma, hw, tile_hw, mask_tail):
    j = pl.program_id(1)

    x = logits_ref[0].astype(jnp.float32)            # (C, T) class-major slab
    tgt = tgt_ref[0]                                 # (1, T) int32 targets
    c, t = x.shape

    # log-softmax over the class (sublane) axis, numerically stable.
    m = jnp.max(x, axis=0, keepdims=True)            # (1, T)
    sh = x - m                                       # (C, T)
    lse = jnp.log(jnp.sum(jnp.exp(sh), axis=0, keepdims=True))   # (1, T)

    # gather log p_target via one-hot select; (c,1) iota broadcasts in the compare.
    cls = jax.lax.broadcasted_iota(jnp.int32, (c, 1), 0)
    onehot = cls == tgt                              # (C, T) bool
    sh_t = jnp.sum(jnp.where(onehot, sh, 0.0), axis=0, keepdims=True)  # (1, T)
    logpt = sh_t - lse                               # log p_t
    pt = jnp.exp(logpt)

    if at_ref is not None:
        # alpha[target] was pre-gathered in the wrapper (lane-dense (1,T) row).
        logpt = logpt * at_ref[0].astype(jnp.float32)

    omp = 1.0 - pt
    g = float(gamma)
    if g.is_integer() and 0.0 <= g <= 64.0:
        gi = int(g)
        if gi == 0:
            mod = jnp.ones_like(omp)
        else:
            # binary exponentiation: gamma=4 -> 2 muls, gamma=8 -> 3 muls.
            mod, base, e = None, omp, gi
            while e:
                if e & 1:
                    mod = base if mod is None else mod * base
                e >>= 1
                if e:
                    base = base * base
    else:
        mod = omp ** jnp.float32(g)
    loss = -mod * logpt                              # (1, T) per-pixel loss

    if mask_tail:
        # only the last spatial block is ragged; fold j into a scalar column limit
        # so non-last blocks compare against limit >= T (everything kept).
        col = jax.lax.broadcasted_iota(jnp.int32, (1, t), 1)
        limit = hw - j * tile_hw
        loss = jnp.where(col < limit, loss, 0.0)

    # per-block partial sum, written to lane 0 of a lane-aligned (1,128) tile.
    block_sum = jnp.sum(loss)
    lane = jax.lax.broadcasted_iota(jnp.int32, (1, 1, 1, 128), 3)
    out_ref[...] = jnp.where(lane == 0, block_sum, 0.0)


def _make_kernel(gamma, hw, tile_hw, use_alpha, mask_tail):
    body = functools.partial(_focal_body, gamma=gamma, hw=hw,
                             tile_hw=tile_hw, mask_tail=mask_tail)
    if use_alpha:
        def kernel(tgt_ref, logits_ref, at_ref, out_ref):
            body(tgt_ref, logits_ref, at_ref, out_ref)
    else:
        def kernel(tgt_ref, logits_ref, out_ref):
            body(tgt_ref, logits_ref, None, out_ref)
    return kernel


def _vmem_capacity_bytes():
    try:
        info = pltpu.get_tpu_info()
        cap = getattr(info, "vmem_capacity_bytes", None)
        if cap:
            return int(cap)
    except Exception:
        pass
    return 128 * 1024 * 1024


_MIN_GRID_BLOCKS = 8   # keep several parallel blocks so dual-TC sharding + pipelining engage


def _pick_tile_hw(b, c, hw, itemsize, use_alpha):
    """Largest lane-aligned spatial tile that respects the real VMEM footprint."""
    vmem_cap = _vmem_capacity_bytes()
    if vmem_cap <= 64 * 1024 * 1024:            # v7x: 64 MiB per TensorCore
        logits_target = 4 * 1024 * 1024
        vmem_limit = 48 * 1024 * 1024
    else:                                       # v5e / v6e: 128 MiB
        logits_target = 8 * 1024 * 1024
        vmem_limit = 64 * 1024 * 1024

    sub = max(8, 32 // max(1, itemsize))        # sublane padding: 8 (f32) / 16 (bf16)
    c_pad = pl.cdiv(c, sub) * sub

    # Per-spatial-column VMEM bytes: double-buffered logits + targets (+ alpha row)
    # plus ~3x f32 temporaries (sh, exp(sh), one-hot select operands).
    per_col = (2 * c_pad * itemsize
               + 2 * 8 * 4
               + (2 * 8 * 4 if use_alpha else 0)
               + 3 * c_pad * 4)
    budget_cols = max(128, (3 * vmem_limit // 4) // per_col)
    target_cols = max(128, logits_target // max(1, c_pad * itemsize))
    cols = min(budget_cols, target_cols)

    # Cap the tile so the "parallel" grid has at least _MIN_GRID_BLOCKS blocks
    # (v7x has 2 TCs sharded over parallel axes; also enables i+1 prefetch overlap).
    if b < _MIN_GRID_BLOCKS:
        need_nj = pl.cdiv(_MIN_GRID_BLOCKS, b)
        cols = min(cols, max(128, pl.cdiv(pl.cdiv(hw, need_nj), 128) * 128))

    if cols >= hw:
        return hw, vmem_limit                   # full spatial extent (always legal)
    return max(128, (cols // 128) * 128), vmem_limit


def focal_loss(logits_nchw, target, gamma=2.0, alpha=None,
               size_average=True, tile_hw=None):
    """Pallas TPU implementation of FocalLoss.forward (NCHW logits, index target)."""
    if logits_nchw.ndim != 4:
        raise ValueError("focal_loss expects NCHW logits")
    b, c, h, w = logits_nchw.shape
    hw = h * w

    # NCHW is already class-major with spatial last: reshape only, no transpose,
    # no padding, no dtype upcast in the wrapper (cast happens in-kernel).
    x = logits_nchw.reshape(b, c, hw)
    t = target.reshape(b, 1, hw).astype(jnp.int32)

    use_alpha = alpha is not None
    if use_alpha:
        if isinstance(alpha, (float, int)):
            # PyTorch builds [alpha, 1 - alpha]; only meaningful for C == 2.
            if c != 2:
                raise ValueError("scalar alpha implies [alpha, 1-alpha]; requires C == 2")
            alpha_vec = jnp.array([float(alpha), 1.0 - float(alpha)], jnp.float32)
        else:
            alpha_vec = jnp.asarray(alpha, jnp.float32).reshape(c)
        # Hoist the alpha gather out of the kernel: a lane-dense (B,1,HW) f32 row
        # replaces one in-kernel (C,T) select + cross-sublane reduce.
        at = alpha_vec[t.reshape(b, hw)].reshape(b, 1, hw)

    itemsize = jnp.dtype(x.dtype).itemsize
    auto_tile, vmem_limit = _pick_tile_hw(b, c, hw, itemsize, use_alpha)
    if tile_hw is None:
        tile_hw = auto_tile
    n_j = pl.cdiv(hw, tile_hw)
    mask_tail = (hw % tile_hw) != 0

    kernel = _make_kernel(float(gamma), hw, tile_hw, use_alpha, mask_tail)

    in_specs = [
        pl.BlockSpec((1, 1, tile_hw), lambda i, j: (i, 0, j)),   # targets (lane-dense)
        pl.BlockSpec((1, c, tile_hw), lambda i, j: (i, 0, j)),   # logits slab (C, T)
    ]
    inputs = [t, x]
    if use_alpha:
        in_specs.append(pl.BlockSpec((1, 1, tile_hw), lambda i, j: (i, 0, j)))  # alpha[target]
        inputs.append(at)

    partials = pl.pallas_call(
        kernel,
        out_shape=jax.ShapeDtypeStruct((b, n_j, 1, 128), jnp.float32),
        grid_spec=pltpu.PrefetchScalarGridSpec(
            num_scalar_prefetch=0,
            grid=(b, n_j),
            in_specs=in_specs,
            out_specs=pl.BlockSpec((1, 1, 1, 128), lambda i, j: (i, j, 0, 0)),
        ),
        compiler_params=pltpu.CompilerParams(
            dimension_semantics=("parallel", "parallel"),
            vmem_limit_bytes=vmem_limit),
    )(*inputs)

    total = jnp.sum(partials)          # only lane 0 of each block is nonzero
    if size_average:
        return total / jnp.float32(b * hw)
    return total


def _reference_focal_loss(logits_nchw, target, gamma=2.0, alpha=None,
                          size_average=True):
    b, c, h, w = logits_nchw.shape
    x = jnp.transpose(logits_nchw, (0, 2, 3, 1)).reshape(-1, c).astype(jnp.float32)
    t = target.reshape(-1).astype(jnp.int32)
    logp = jax.nn.log_softmax(x, axis=1)
    logpt = jnp.take_along_axis(logp, t[:, None], axis=1)[:, 0]
    pt = jnp.exp(logpt)
    if alpha is not None:
        if isinstance(alpha, (float, int)):
            a = jnp.array([float(alpha), 1.0 - float(alpha)], jnp.float32)
        else:
            a = jnp.asarray(alpha, jnp.float32)
        logpt = logpt * a[t]
    loss = -((1.0 - pt) ** gamma) * logpt
    return jnp.mean(loss) if size_average else jnp.sum(loss)


if __name__ == "__main__":
    key = jax.random.PRNGKey(0)
    k1, k2, k3, k4 = jax.random.split(key, 4)

    # case 1: per-class alpha list, gamma=2, mean reduction (tiles into multiple blocks)
    B, C, H, W = 2, 4, 16, 16
    logits = jax.random.normal(k1, (B, C, H, W), dtype=jnp.float32)
    target = jax.random.randint(k2, (B, H, W), 0, C, dtype=jnp.int32)
    alpha = [0.1, 0.2, 0.3, 0.4]
    out = jax.block_until_ready(
        focal_loss(logits, target, gamma=2.0, alpha=alpha, size_average=True))
    ref = _reference_focal_loss(logits, target, gamma=2.0, alpha=alpha,
                                size_average=True)
    assert jnp.allclose(out, ref, rtol=1e-5, atol=1e-5), (out, ref)

    # case 2: no alpha, sum reduction
    out2 = jax.block_until_ready(
        focal_loss(logits, target, gamma=2.0, alpha=None, size_average=False))
    ref2 = _reference_focal_loss(logits, target, gamma=2.0, alpha=None,
                                 size_average=False)
    assert jnp.allclose(out2, ref2, rtol=1e-5, atol=1e-5), (out2, ref2)

    # case 3: ragged spatial extent (HW = 400, not a multiple of the 128-lane tile)
    B3, C3, H3, W3 = 2, 4, 20, 20
    logits3 = jax.random.normal(k3, (B3, C3, H3, W3), dtype=jnp.float32)
    target3 = jax.random.randint(k4, (B3, H3, W3), 0, C3, dtype=jnp.int32)
    out3 = jax.block_until_ready(
        focal_loss(logits3, target3, gamma=2.0, alpha=alpha, size_average=True))
    ref3 = _reference_focal_loss(logits3, target3, gamma=2.0, alpha=alpha,
                                 size_average=True)
    assert jnp.allclose(out3, ref3, rtol=1e-5, atol=1e-5), (out3, ref3)

    print("KERNEL_OK")
</pallas_src>

<mosaic_0001>
module attributes {stable_mosaic.version = 11 : i64} {
  func.func @kernel(%arg0: i32, %arg1: i32, %arg2: memref<1x1x128xi32, #tpu.memory_space<vmem>>, %arg3: memref<1x4x128xf32, #tpu.memory_space<vmem>>, %arg4: memref<1x1x128xf32, #tpu.memory_space<vmem>>, %arg5: memref<1x1x1x128xf32, #tpu.memory_space<vmem>>) attributes {dimension_semantics = [#tpu.dimension_semantics<parallel>, #tpu.dimension_semantics<parallel>], iteration_bounds = array<i64: 2, 2>, scalar_prefetch = 0 : i64, scratch_operands = 0 : i64, tpu.core_type = #tpu.core_type<tc>, window_params = [{transform_indices = @transform_0, window_bounds = array<i64: 1, 1, 128>}, {transform_indices = @transform_1, window_bounds = array<i64: 1, 4, 128>}, {transform_indices = @transform_2, window_bounds = array<i64: 1, 1, 128>}, {transform_indices = @transform_3, window_bounds = array<i64: 1, 1, 1, 128>}]} {
    %c0 = arith.constant 0 : index
    %c0_0 = arith.constant 0 : index
    %c0_1 = arith.constant 0 : index
    %0 = vector.load %arg3[%c0, %c0_0, %c0_1] : memref<1x4x128xf32, #tpu.memory_space<vmem>>, vector<1x4x128xf32>
    %1 = vector.shape_cast %0 : vector<1x4x128xf32> to vector<4x128xf32>
    %c0_2 = arith.constant 0 : index
    %c0_3 = arith.constant 0 : index
    %c0_4 = arith.constant 0 : index
    %2 = vector.load %arg2[%c0_2, %c0_3, %c0_4] : memref<1x1x128xi32, #tpu.memory_space<vmem>>, vector<1x1x128xi32>
    %3 = vector.shape_cast %2 : vector<1x1x128xi32> to vector<1x128xi32>
    %cst = arith.constant dense<0xFF800000> : vector<128xf32>
    %4 = vector.multi_reduction <maximumf>, %1, %cst [0] : vector<4x128xf32> to vector<128xf32>
    %5 = vector.shape_cast %4 : vector<128xf32> to vector<1x128xf32>
    %6 = vector.broadcast %5 : vector<1x128xf32> to vector<4x128xf32>
    %7 = arith.subf %1, %6 : vector<4x128xf32>
    %8 = math.exp %7 : vector<4x128xf32>
    %cst_5 = arith.constant dense<0.000000e+00> : vector<128xf32>
    %9 = vector.multi_reduction <add>, %8, %cst_5 [0] : vector<4x128xf32> to vector<128xf32>
    %10 = vector.shape_cast %9 : vector<128xf32> to vector<1x128xf32>
    %11 = math.log %10 : vector<1x128xf32>
    %12 = tpu.iota {dimensions = array<i32: 0>} : vector<4x1xi32>
    %13 = vector.broadcast %12 : vector<4x1xi32> to vector<4x128xi32>
    %14 = vector.broadcast %3 : vector<1x128xi32> to vector<4x128xi32>
    %15 = arith.cmpi eq, %13, %14 : vector<4x128xi32>
    %cst_6 = arith.constant 0.000000e+00 : f32
    %16 = vector.broadcast %cst_6 : f32 to vector<4x128xf32>
    %17 = arith.select %15, %7, %16 : vector<4x128xi1>, vector<4x128xf32>
    %cst_7 = arith.constant dense<0.000000e+00> : vector<128xf32>
    %18 = vector.multi_reduction <add>, %17, %cst_7 [0] : vector<4x128xf32> to vector<128xf32>
    %19 = vector.shape_cast %18 : vector<128xf32> to vector<1x128xf32>
    %20 = arith.subf %19, %11 : vector<1x128xf32>
    %21 = math.exp %20 : vector<1x128xf32>
    %c0_8 = arith.constant 0 : index
    %c0_9 = arith.constant 0 : index
    %c0_10 = arith.constant 0 : index
    %22 = vector.load %arg4[%c0_8, %c0_9, %c0_10] : memref<1x1x128xf32, #tpu.memory_space<vmem>>, vector<1x1x128xf32>
    %23 = vector.shape_cast %22 : vector<1x1x128xf32> to vector<1x128xf32>
    %24 = arith.mulf %20, %23 : vector<1x128xf32>
    %cst_11 = arith.constant 1.000000e+00 : f32
    %25 = vector.broadcast %cst_11 : f32 to vector<1x128xf32>
    %26 = arith.subf %25, %21 : vector<1x128xf32>
    %27 = arith.mulf %26, %26 : vector<1x128xf32>
    %cst_12 = arith.constant 0.000000e+00 : f32
    %28 = vector.broadcast %cst_12 : f32 to vector<1x128xf32>
    %29 = arith.subf %28, %27 : vector<1x128xf32>
    %30 = arith.mulf %29, %24 : vector<1x128xf32>
    %31 = vector.shape_cast %30 : vector<1x128xf32> to vector<1x1x128xf32>
    %cst_13 = arith.constant dense<0.000000e+00> : vector<1xf32>
    %32 = vector.multi_reduction <add>, %31, %cst_13 [1, 2] : vector<1x1x128xf32> to vector<1xf32>
    %33 = vector.shape_cast %32 : vector<1xf32> to vector<1x1x1xf32>
    %34 = vector.extract %33[0, 0, 0] : f32 from vector<1x1x1xf32>
    %35 = tpu.iota {dimensions = array<i32: 3>} : vector<1x1x1x128xi32>
    %c0_i32 = arith.constant 0 : i32
    %36 = vector.broadcast %c0_i32 : i32 to vector<1x1x1x128xi32>
    %37 = arith.cmpi eq, %35, %36 : vector<1x1x1x128xi32>
    %cst_14 = arith.constant 0.000000e+00 : f32
    %38 = vector.broadcast %34 : f32 to vector<1x1x1x128xf32>
    %39 = vector.broadcast %cst_14 : f32 to vector<1x1x1x128xf32>
    %40 = arith.select %37, %38, %39 : vector<1x1x1x128xi1>, vector<1x1x1x128xf32>
    %c0_15 = arith.constant 0 : index
    %c0_16 = arith.constant 0 : index
    %c0_17 = arith.constant 0 : index
    %c0_18 = arith.constant 0 : index
    %41 = vector.load %arg5[%c0_15, %c0_16, %c0_17, %c0_18] : memref<1x1x1x128xf32, #tpu.memory_space<vmem>>, vector<1x1x1x128xf32>
    tpu.vector_store %arg5[%c0_15, %c0_16, %c0_17, %c0_18], %40 {strides = array<i32>} : memref<1x1x1x128xf32, #tpu.memory_space<vmem>>, vector<1x1x1x128xf32>,
    return
  }
  func.func @transform_0(%arg0: i32, %arg1: i32) -> (i32, i32, i32) {
    %c0_i32 = arith.constant 0 : i32
    %c0_i32_0 = arith.constant 0 : i32
    return %arg0, %c0_i32, %arg1 : i32, i32, i32
  }
  func.func @transform_1(%arg0: i32, %arg1: i32) -> (i32, i32, i32) {
    %c0_i32 = arith.constant 0 : i32
    %c0_i32_0 = arith.constant 0 : i32
    return %arg0, %c0_i32, %arg1 : i32, i32, i32
  }
  func.func @transform_2(%arg0: i32, %arg1: i32) -> (i32, i32, i32) {
    %c0_i32 = arith.constant 0 : i32
    %c0_i32_0 = arith.constant 0 : i32
    return %arg0, %c0_i32, %arg1 : i32, i32, i32
  }
  func.func @transform_3(%arg0: i32, %arg1: i32) -> (i32, i32, i32, i32) {
    %c0_i32 = arith.constant 0 : i32
    %c0_i32_0 = arith.constant 0 : i32
    %c0_i32_1 = arith.constant 0 : i32
    return %arg0, %arg1, %c0_i32, %c0_i32_0 : i32, i32, i32, i32
  }
}

</mosaic_0001>

<bundles_post_ra>
// kernel: tpu_custom_call.1
= control target key start
LH: loop header
LB: loop body
LE: loop exit
PB: predicated region body
PF: predicated region fallthrough
CT: control target
= control target key end

     0   :  { %s986_s0 = inlined_call_operand.hbm [shape: s32[2,1,256], index: 0, kind: input, shape index: {}]   ;;  %s987_s1 = inlined_call_operand.hbm [shape: f32[2,4,256], index: 1, kind: input, shape index: {}]   ;;  %s988_s2 = inlined_call_operand.hbm [shape: f32[2,1,256], index: 2, kind: input, shape index: {}]   ;;  %s989_s3 = inlined_call_operand.hbm [shape: f32[2,2,1,128], index: 3, kind: output, shape index: {}]  }
   0x1   :  { %994 = sst [smem:[#allocation17_spill]] %s987_s1 }
   0x2   :  { %8 = vsyncpa [#allocation3], 0 }
   0x3   :  { %10 = vsyncpa [#allocation3 + $0x1], 0 }
   0x4   :  { %11 = vsyncpa [#allocation6], 0 }
   0x5   :  { %13 = vsyncpa [#allocation6 + $0x1], 0 }
   0x6   :  { %14 = vsyncpa [#allocation4], 0 }
   0x7   :  { %16 = vsyncpa [#allocation4 + $0x1], 0  ;;  %s800_s12 = smov 0   ;;  %s802_s13 = smov 0  }
   0x8   :  { %s804_s14 = smov 0   ;;  %s806_s15 = smov 0  }
   0x9   :  { %s808_s16 = smov 0   ;;  %s810_s17 = smov 0  }
   0xa   :  { %s812_s18 = smov 0   ;;  %s814_s19 = smov 0  }
   0xb LB: > { %995 = sst [smem:[#allocation12_spill]] %s770_s17  ;;  %s841_s20 = sadd.s32 4294967295, %s778_s19   ;;  %s778_s19 = sphi %s814_s19, %s22_s19   ;;  %s774_s18 = sphi %s812_s18, %s1011_s18   ;;  %s770_s17 = sphi %s810_s17, %s1010_s17   ;;  %s766_s16 = sphi %s808_s16, %s1009_s16   ;;  %s762_s15 = sphi %s806_s15, %s1008_s15   ;;  %s758_s14 = sphi %s804_s14, %s1014_s14   ;;  %s754_s13 = sphi %s802_s13, %s1013_s13   ;;  %s750_s12 = sphi %s800_s12, %s1012_s12  }
   0xc   : > { %996 = sst [smem:[#allocation13_spill]] %s774_s18  ;;  %s476_s21 = sadd.s32 4294967294, %s778_s19  }
   0xd   : > { %s31_s22 = sadd.s32 1, %s770_s17  ;;  %s34_s23 = sadd.s32 1, %s774_s18 }
   0xe   : > { %p32_p0 = scmp.ge.s32.totalorder %s31_s22, 2  ;;  %s43_s24 = sadd.s32 1, %s758_s14 }
   0xf   : > { %p50_p1 = scmp.ne.s32.totalorder %s758_s14, %s754_s13  ;;  %p51_p2 = scmp.eq.s32.totalorder %s778_s19, 0 }
  0x10   : > { %s1016_s22 = smov (%p32_p0, %s31_s22), 0  ;;  %s1018_s23 = smov (!%p32_p0, %s34_s23), %s774_s18 }
  0x11   : > { %997 = sst [smem:[#allocation14_spill]] %s1016_s22  ;;  %s39_s25 = ssub.s32 %s770_s17, %s1016_s22 }
  0x12   : > { %p855_p3 = por %p51_p2, %p50_p1  ;;  %p36_p4 = scmp.ge.s32.totalorder %s1018_s23, 2 }
  0x13   : > { %p56_p5 = scmp.ne.s32.totalorder %s754_s13, %s750_s12  ;;  %p57_p6 = scmp.eq.s32.totalorder %s841_s20, 0 }
  0x14   : > { %p138_p7 = scmp.eq.s32.totalorder %s841_s20, 3  ;;  %s1020_s23 = smov (%p36_p4, %s1018_s23), 0 }
  0x15   : > { %999 = sst [smem:[#allocation15_spill]] %s1020_s23  ;;  %p865_p8 = por %p57_p6, %p56_p5 }
  0x16   : > { %p869_p9 = por %p138_p7, %p50_p1  ;;  %s38_s29 = ssub.s32 %s774_s18, %s1020_s23 }
  0x17   : > { %p144_p10 = scmp.eq.s32.totalorder %s476_s21, 3  ;;  %s40_s30 = sor.u32 %s39_s25, %s38_s29 }
  0x18   : > { %p41_p11 = scmp.eq.s32.totalorder %s40_s30, 0  ;;  %p513_p13 = scmp.lt.s32.totalorder %s778_s19, 4 }
  0x19   : > { %p875_p12 = por %p144_p10, %p56_p5  ;;  %s881_s5 = sand.u32 1, %s758_s14  }
  0x1a   : > { %s884_s6 = scalar_select %p41_p11, %s758_s14, %s43_s24  }
  0x1b   : > { %s479_s7 = sshll.u32 %s774_s18, 1  ;;  %p889_p0 = pnand %p513_p13, %p855_p3 }
  0x1c   : > { %1003 = sst [smem:[#allocation16_spill]] %s884_s6  ;;  %s171_s9 = sadd.s32 %s770_s17, %s479_s7 }
  0x1d   : > { %s183_s10 = sand.u32 1, %s778_s19   ;;  %s480_s11 = sshll.u32 %s881_s5, 2 }
  0x1e   : > { %s482_s21 = sshll.u32 %s171_s9, 2  ;;  %s1005_s1 = sld [smem:[#allocation17_spill]] }
  0x1f   : > { %s187_s24 = scalar_lea.vmem [#allocation5], %s480_s11  ;;  %s184_s26 = scalar_lea.sflag [#allocation6], %s183_s10 }
  0x20   : > { %s197_s22 = sshll.u32 %s187_s24, 4  ;;  %p484_p1 = scmp.ge.s32.totalorder %s778_s19, 1  ;;  %s198_s22 = int_to_ptr.vmem [resolvable:$true] %s197_s22 }
  0x21   : > { %p221_p2 = scmp.lt.s32.totalorder %s778_s19, 5  ;;  %s172_s29 = scalar_lea.hbm %s986_s0, %s171_s9 }
  0x22   : > { %s174_s11 = sshll.u32 %s172_s29, 4  ;;  %s212_s10 = scalar_lea.hbm %s988_s2, %s171_s9  ;;  %s175_s11 = int_to_ptr.hbm [resolvable:$true] %s174_s11 }
  0x23   : > { %p903_p3 = pnand %p484_p1, %p221_p2  ;;  %s214_s18 = sshll.u32 %s212_s10, 4  ;;  %s215_s18 = int_to_ptr.hbm [resolvable:$true] %s214_s18 }
  0x24   : > { %s193_s30 = scalar_lea.hbm %s1005_s1, %s482_s21  ;;  %s165_s1 = scalar_lea.sflag [#allocation3], %s881_s5 }
  0x25   : > { %s195_s23 = sshll.u32 %s193_s30, 4  ;;  %s167_s30 = scalar_lea.vmem [#allocation2], %s881_s5  ;;  %s196_s23 = int_to_ptr.hbm [resolvable:$true] %s195_s23 }
  0x26   : > { %505 = dma.hbm_to_vmem [thread:$0]  (!%p889_p0), %s196_s23, 64, %s198_s22, %s184_s26  }
  0x27   : > { %s176_s24 = sshll.u32 %s167_s30, 4  ;;  %s207_s17 = scalar_lea.vmem [#allocation7], %s881_s5  ;;  %s177_s24 = int_to_ptr.vmem [resolvable:$true] %s176_s24 }
  0x28   : > { %502 = dma.hbm_to_vmem [thread:$0]  (!%p889_p0), %s175_s11, 16, %s177_s24, %s165_s1  }
  0x29   : > { %s216_s6 = sshll.u32 %s207_s17, 4  ;;  %225 = sbr.rel (%p903_p3) target bundleno = 300 (0x12c), region = 32  ;;  %s217_s6 = int_to_ptr.vmem [resolvable:$true] %s216_s6 }
  0x2a   : > { %508 = dma.hbm_to_vmem [thread:$0]  (!%p889_p0), %s215_s18, 16, %s217_s6, %s184_s26  }
  0x2b   : > { %s923_s25 = sand.u32 (!%p903_p3), 1, %s754_s13  }
  0x2c   : > { %s228_s1 = scalar_lea.sflag (!%p903_p3), [#allocation3], %s923_s25  ;;  %s230_s21 = scalar_lea.vmem (!%p903_p3), [#allocation2], %s923_s25 }
  0x2e   : > { %737 = dma.done.wait (%p865_p8), %s228_s1, 16  }
  0x2f   : > { %739 = vsyncadd (%p865_p8), %s228_s1, 4294967280  ;;  %s236_s17 = sand.u32 1, %s841_s20   ;;  %s485_s18 = sshll.u32 %s923_s25, 2 }
  0x30   : > { %s237_s5 = scalar_lea.sflag [#allocation6], %s236_s17  ;;  %s240_s6 = scalar_lea.vmem [#allocation5], %s485_s18 }
  0x31   : > { %741 = dma.done.wait (%p865_p8), %s237_s5, 80  }
  0x32   : > { %743 = vsyncadd (%p865_p8), %s237_s5, 4294967216  ;;  %vm282_vm0 = vcmask 1043456   ;;  %v280_v0 = vld [vmem:[%s240_s6] sm:$0xf]  ;;  %v302_v5 = vlaneseq  ;;  %v579_v9 = vld [vmem:[%s230_s21] ss:$0 sm:$0xff] }
  0x33   : > { %v283_v1 = vsel %vm282_vm0, %v280_v0, -inf  ;;  %s249_s20 = scalar_lea.vmem [#allocation7], %s923_s25  ;;  %vm323_vm2 = vcmask 1040384   ;;  %s486_s27 = sshll.u32 %s766_s16, 1 }
  0x34   : > { %v284_v2 = vrot.slane %v283_v1, 4  ;;  %v303_v8 = vshrl.u32 %v302_v5, 7  ;;  %v317_v34 = vld [vmem:[%s249_s20] sm:$0x1]  ;;  %s350_s8 = sadd.s32 %s762_s15, %s486_s27  ;;  %v335_v48 = vand.u32 127, %v302_v5  ;;  %s279_s29 = scalar_lea.vmem [#allocation8], %s923_s25 }
  0x35   : > { %s351_s7 = scalar_lea.hbm %s989_s3, %s350_s8  ;;  %s353_s11 = sshll.u32 %s279_s29, 4  ;;  %s354_s11 = int_to_ptr.vmem [resolvable:$true] %s353_s11 }
  0x36   : > { %v285_v3 = vmax.f32 %v283_v1, %v284_v2  ;;  %vm305_vm1 = vcmp.eq.s32.totalorder %v303_v8, %v579_v9  ;;  %s355_s30 = sshll.u32 %s351_s7, 4  ;;  %vm336_vm3 = vcmp.eq.s32.totalorder %v335_v48, 0  ;;  %s341_s22 = scalar_lea.sflag [#allocation4], %s923_s25  ;;  %s356_s30 = int_to_ptr.hbm [resolvable:$true] %s355_s30 }
  0x37   : > { %s690_s23 = sshra.s32 %s356_s30, 4  ;;  %s696_s1 = scalar_lea.hbm %s989_s3, 4  ;;  %s691_s23 = int_to_ptr.hbm [resolvable:$true] %s690_s23 }
  0x38   : > { %v286_v4 = vrot.slane %v285_v3, 2  ;;  %s692_s15 = scalar_lea.hbm %s691_s23, 1  ;;  %p697_p7 = scmp.lt.s32.totalorder %s691_s23, %s989_s3 }
  0x39   : > { %p693_p4 = scmp.ne.s32.totalorder %s691_s23, %s692_s15  ;;  %p698_p8 = scmp.lt.s32.totalorder %s696_s1, %s692_s15 }
  0x3a   : > { %v287_v6 = vmax.f32 %v285_v3, %v286_v4 }
  0x3b   : > { %p694_p5 = pnand %p693_p4, %p869_p9  ;;  %p699_p10 = por %p698_p8, %p697_p7 }
  0x3c   : > { %v288_v7 = vrot.slane %v287_v6, 1 }
  0x3d   : > { %p695_p6 = pneg %p694_p5 }
  0x3e   : > { %v289_v10 = vmax.f32 %v287_v6, %v288_v7 }
  0x3f   : > { %p700_p11 = pnand %p699_p10, %p695_p6 }
  0x40   : > { %v290_v11 = vsub.f32 %v280_v0, %v289_v10 }
  0x42   : > { %v291_v12 = vmul.f32 1.442695, %v290_v11  ;;  %v306_v13 = vsel %vm305_vm1, %v290_v11, 0.0 }
  0x43   : > { %v307_v14 = vsel %vm282_vm0, %v306_v13, 0.0 }
  0x44   : > { %580 = vpow2.f32 %v291_v12  ;;  %v308_v15 = vrot.slane %v307_v14, 4 }
  0x46   : > { %v309_v19 = vadd.f32 %v308_v15, %v307_v14 }
  0x48   : > { %v310_v22 = vrot.slane %v309_v19, 2 }
  0x4a   : > { %v581_v16 = vpop.eup %580  ;;  %v311_v25 = vadd.f32 %v310_v22, %v309_v19 }
  0x4b   : > { %v293_v17 = vsel %vm282_vm0, %v581_v16, 0.0 }
  0x4c   : > { %v294_v18 = vrot.slane %v293_v17, 4  ;;  %v312_v27 = vrot.slane %v311_v25, 1 }
  0x4e   : > { %v295_v20 = vadd.f32 %v294_v18, %v293_v17  ;;  %v313_v28 = vadd.f32 %v312_v27, %v311_v25 }
  0x50   : > { %v296_v21 = vrot.slane %v295_v20, 2 }
  0x52   : > { %v297_v23 = vadd.f32 %v296_v21, %v295_v20 }
  0x54   : > { %v298_v24 = vrot.slane %v297_v23, 1 }
  0x56   : > { %v299_v26 = vadd.f32 %v298_v24, %v297_v23 }
  0x58   : > { %582 = vlog2.f32 %v299_v26 }
  0x5e   : > { %v583_v29 = vpop.eup %582 }
  0x5f   : > { %v301_v30 = vmul.f32 0.6931472, %v583_v29 }
  0x61   : > { %v314_v31 = vsub.f32 %v313_v28, %v301_v30 }
  0x63   : > { %v315_v32 = vmul.f32 1.442695, %v314_v31  ;;  %v318_v36 = vmul.f32 %v317_v34, %v314_v31 }
  0x65   : > { %584 = vpow2.f32 %v315_v32 }
  0x6b   : > { %v585_v33 = vpop.eup %584 }
  0x6c   : > { %v319_v35 = vsub.f32 1.0, %v585_v33 }
  0x6e   : > { %v320_v37 = vmul.f32 %v319_v35, %v319_v35 }
  0x70   : > { %v321_v38 = vsub.f32 0.0, %v320_v37 }
  0x72   : > { %v322_v39 = vmul.f32 %v321_v38, %v318_v36 }
  0x74   : > { %v324_v40 = vsel %vm323_vm2, %v322_v39, 0.0 }
  0x75   : > { %325 = vadd.xlane.f32.xlu0 %v324_v40 }
  0xe8   : > { %v326_v41 = vpop.xlane.xlu0 %325 }
  0xe9   : > { %v327_v42 = vrot.slane %v326_v41, 4 }
  0xeb   : > { %v328_v43 = vadd.f32 %v327_v42, %v326_v41 }
  0xed   : > { %v329_v44 = vrot.slane %v328_v43, 2 }
  0xef   : > { %v330_v45 = vadd.f32 %v329_v44, %v328_v43 }
  0xf1   : > { %v331_v46 = vrot.slane %v330_v45, 1 }
  0xf3   : > { %v332_v47 = vadd.f32 %v331_v46, %v330_v45 }
  0xf5   : > { %489 = vpush %v332_v47 }
 0x126   : > { %s490_s24 = spop %489 }
 0x127   : > { %v337_v49 = vstv %s490_s24 }
 0x128   : > { %v338_v50 = vsel %vm336_vm3, %v337_v49, 0.0 }
 0x129   : > { %339 = vst [vmem:[%s279_s29] sm:$0x1] %v338_v50 }
 0x12a   : > { %703 = shalt.err (!%p700_p11)
}
 0x12b   : > { %497 = dma.vmem_to_hbm [thread:$0]  (%p869_p9), %s354_s11, 16, %s356_s30, %s341_s22  }
 0x12c PF: > { %p514_p13 = scmp.ge.s32.totalorder %s778_s19, 2  ;;  %s367_s25 = sand.u32 1, %s750_s12  }
 0x12d   : > { %s368_s18 = scalar_lea.sflag [#allocation4], %s367_s25 }
 0x12e   : > { %p510_p0 = pnand %p514_p13, %p875_p12 }
 0x130   : > { %p511_p1 = pneg %p510_p0 }
 0x132   : > { %745 = dma.done.wait (%p511_p1), %s368_s18, 16  }
 0x133   : > { %747 = vsyncadd (%p511_p1), %s368_s18, 4294967280  ;;  %s22_s19 = sadd.s32 1, %s778_s19   ;;  %s1007_s5 = sld [smem:[#allocation16_spill]] }
 0x134   : > { %p19_p2 = scmp.ge.s32.totalorder %s22_s19, 6   ;;  %s1008_s15 = sld [smem:[#allocation12_spill]] }
 0x135   : > { %s1009_s16 = sld [smem:[#allocation13_spill]]  ;;  %s1012_s12 = smov %s754_s13 }
 0x136   : > { %s1010_s17 = sld [smem:[#allocation14_spill]]  ;;  %s1013_s13 = smov %s758_s14 }
 0x137   : > { %s1011_s18 = sld [smem:[#allocation15_spill]]  ;;  %21 = sbr.rel (!%p19_p2) target bundleno = 11 (0xb), region = 101 }
 0x139   : > { %s1014_s14 = smov %s1007_s5 }
 0x13c   :  { %373 = vsyncpa [#allocation3], 1 }
 0x13d   :  { %375 = vsyncpa [#allocation3 + $0x1], 1 }
 0x13e   :  { %376 = vsyncpa [#allocation6], 1 }
 0x13f   :  { %378 = vsyncpa [#allocation6 + $0x1], 1 }
 0x140   :  { %379 = vsyncpa [#allocation4], 1 }
 0x141   :  { %381 = vsyncpa [#allocation4 + $0x1], 1 }

</bundles_post_ra>
